<compile_context>
chip_gen: v7x
topology: tpu7x:2x2x1
jax: 0.10.0
libtpu: 0.0.40
codegen_flags: <defaults>
</compile_context>

<pallas_src>
import functools
import numpy as np
import jax
import jax.numpy as jnp
from jax.experimental import pallas as pl
from jax.experimental.pallas import tpu as pltpu

# ConvTranspose2d(kernel=4, stride=2, padding=1) phase decomposition.
# Output row 2a+r gets contributions from (kernel-row, input-row-shift) pairs:
#   r=0: (kh=1, dh=0), (kh=3, dh=-1)     r=1: (kh=2, dh=0), (kh=0, dh=+1)
# (identically for columns).  The input carries a 1-px zero border so shifted
# slices always stay in bounds.
_TAPS = {0: ((1, 0), (3, -1)), 1: ((2, 0), (0, 1))}
_VIEW_OFFSETS = tuple((dh, dw) for dh in (-1, 0, 1) for dw in (-1, 0, 1))


def _up_kernel(x_ref, w_ref, b_ref, o_ref, *, TH, W, leaky, flat, fused):
    """One batch element, one TH-row output tile.

    x_ref: [1, H+2, W+2, Cin]  zero-bordered NHWC input (resident across row tiles)
    w_ref: fused:  [9*Cin, 4*Cout] tap+phase packed weight (zero blocks for
                   unused (tap, phase) pairs)
           phased: [4, 4*Cin, Cout] per-phase tap-packed weights (phase p=2r+s)
    b_ref: [1, 4*Cout]         bias tiled over the 4 phases
    o_ref: [1, TH, W, 4*Cout]  phases folded into channels (lane-dense store)
    """
    h0 = pl.multiple_of(pl.program_id(1) * TH, TH)

    # Dedup: each of the 9 distinct shifted views is read exactly once.
    views = {}
    for dh in (-1, 0, 1):
        for dw in (-1, 0, 1):
            v = x_ref[0, pl.ds(h0 + 1 + dh, TH), 1 + dw:1 + dw + W, :]
            if flat:
                v = v.reshape(TH * W, v.shape[-1])   # big-M 2-D matmul operand
            views[(dh, dw)] = v

    if fused:
        # Single MXU matmul: K = 9*Cin, N = 4*Cout (fits one MXU tile).
        lhs = jnp.concatenate([views[o] for o in _VIEW_OFFSETS], axis=-1)
        acc = jnp.dot(lhs, w_ref[...], preferred_element_type=jnp.float32)
    else:
        # One MXU matmul per output phase, contraction K = 4*Cin.
        outs = []
        for r in (0, 1):
            for s in (0, 1):
                lhs = jnp.concatenate(
                    [views[(dh, dw)] for _, dh in _TAPS[r] for _, dw in _TAPS[s]],
                    axis=-1)                          # [., 4*Cin]
                outs.append(jnp.dot(lhs, w_ref[2 * r + s],
                                    preferred_element_type=jnp.float32))
        acc = jnp.concatenate(outs, axis=-1)          # [., 4*Cout]

    # Single store of all 4 phases: last dim = 4*Cout (lane-dense).
    acc = acc + b_ref[0]
    if leaky:
        acc = jnp.where(acc >= 0, acc, 0.2 * acc)     # LeakyReLU(0.2)
    if flat:
        acc = acc.reshape(TH, W, -1)
    o_ref[0] = acc.astype(o_ref.dtype)


def _pick_row_tile(h, target):
    """Largest divisor of h that is <= target (grid tiles h exactly)."""
    t = max(1, min(h, target))
    while h % t:
        t -= 1
    return t


def up_forward(x1, x2, weight, bias, *, concat=True, final=False,
               compute_dtype=None, row_tile=64, fuse_phases=None):
    """Forward pass of `up`.  x1, x2 are NCHW; weight is [in_ch, out_ch, 4, 4]."""
    # TODO(synk): output_padding != 0 is not implemented (module default is 0).
    # ---- glue: NCHW -> NHWC; fuse the PyTorch F.pad with the 1-px halo pad.
    x1n = jnp.transpose(x1, (0, 2, 3, 1))
    if concat:
        x2n = jnp.transpose(x2, (0, 2, 3, 1))
        dY = x2.shape[2] - x1.shape[2]
        dX = x2.shape[3] - x1.shape[3]
        x1n = jnp.pad(x1n, ((0, 0),
                            (1 + dY // 2, 1 + dY - dY // 2),
                            (1 + dX // 2, 1 + dX - dX // 2), (0, 0)))
        x2n = jnp.pad(x2n, ((0, 0), (1, 1), (1, 1), (0, 0)))
        xp = jnp.concatenate((x2n, x1n), axis=-1)     # torch.cat((x2, x1), dim=1)
    else:
        xp = jnp.pad(x1n, ((0, 0), (1, 1), (1, 1), (0, 0)))

    N, Hp, Wp, Cin = xp.shape
    H, W = Hp - 2, Wp - 2
    Cout = weight.shape[1]
    out_dtype = xp.dtype
    cdt = compute_dtype if compute_dtype is not None else xp.dtype
    xp = xp.astype(cdt)

    # Fused single-matmul path only when the packed contraction/output fit one
    # MXU tile on every chip generation (128x128).
    fused = fuse_phases
    if fused is None:
        fused = (9 * Cin <= 128) and (4 * Cout <= 128)

    w4 = jnp.transpose(weight, (2, 3, 0, 1)).astype(cdt)     # [kh, kw, Cin, Cout]
    if fused:
        # Big packed weight: rows = 9 shifted views, cols = 4 phases; block
        # (view (dh,dw), phase (r,s)) = weight[:,:,kh,kw] if the view feeds that
        # phase, else zeros.
        zero = jnp.zeros((Cin, Cout), cdt)
        rows = []
        for dh, dw in _VIEW_OFFSETS:
            cols = []
            for r in (0, 1):
                for s in (0, 1):
                    kh = dict((d, k) for k, d in _TAPS[r]).get(dh)
                    kw = dict((d, k) for k, d in _TAPS[s]).get(dw)
                    cols.append(zero if (kh is None or kw is None) else w4[kh, kw])
            rows.append(jnp.concatenate(cols, axis=1))
        w_packed = jnp.concatenate(rows, axis=0)             # [9*Cin, 4*Cout]
        w_spec = pl.BlockSpec((9 * Cin, 4 * Cout), lambda n, h: (0, 0))
    else:
        # Tap-packed per-phase weights: wp[2r+s] = concat over that phase's 4
        # taps of weight[:, :, kh, kw]  ->  [4*Cin, Cout].
        w_packed = jnp.stack(
            [jnp.concatenate([w4[kh, kw]
                              for kh, _ in _TAPS[r] for kw, _ in _TAPS[s]], axis=0)
             for r in (0, 1) for s in (0, 1)], axis=0)       # [4, 4*Cin, Cout]
        w_spec = pl.BlockSpec((4, 4 * Cin, Cout), lambda n, h: (0, 0, 0))

    b2 = jnp.tile(bias.astype(jnp.float32), 4)[None, :]      # [1, 4*Cout]

    TH = _pick_row_tile(H, row_tile)
    flat = (W % 8 == 0)            # spatial flatten is a free relayout then
    kernel = functools.partial(_up_kernel, TH=TH, W=W, leaky=not final,
                               flat=flat, fused=fused)

    out = pl.pallas_call(
        kernel,
        out_shape=jax.ShapeDtypeStruct((N, H, W, 4 * Cout), out_dtype),
        grid=(N, H // TH),
        in_specs=[
            # Whole padded image per batch element; same block index across the
            # row-tile axis -> stays resident in VMEM (no re-fetch per tile).
            pl.BlockSpec((1, Hp, Wp, Cin), lambda n, h: (n, 0, 0, 0)),
            w_spec,
            pl.BlockSpec((1, 4 * Cout), lambda n, h: (0, 0)),
        ],
        out_specs=pl.BlockSpec((1, TH, W, 4 * Cout), lambda n, h: (n, h, 0, 0)),
        compiler_params=pltpu.CompilerParams(
            dimension_semantics=("parallel", "parallel"),
            vmem_limit_bytes=48 * 1024 * 1024),
    )(xp, w_packed, b2)

    # [N,H,W,4C] -> [N,H,W,2,2,C] -> [N,H,2,W,2,C] -> [N,2H,2W,C] -> NCHW
    out = out.reshape(N, H, W, 2, 2, Cout)
    out = jnp.transpose(out, (0, 1, 3, 2, 4, 5)).reshape(N, 2 * H, 2 * W, Cout)
    return jnp.transpose(out, (0, 3, 1, 2))


def _ref_up(x1, x2, weight, bias, concat=True, final=False):
    """Independent numpy reference (direct transposed-conv scatter)."""
    x1 = np.asarray(x1, np.float32)
    x2 = np.asarray(x2, np.float32)
    w = np.asarray(weight, np.float32)
    b = np.asarray(bias, np.float32)
    if concat:
        diffY = x2.shape[2] - x1.shape[2]
        diffX = x2.shape[3] - x1.shape[3]
        x1 = np.pad(x1, ((0, 0), (0, 0),
                         (diffY // 2, diffY - diffY // 2),
                         (diffX // 2, diffX - diffX // 2)))
        x = np.concatenate((x2, x1), axis=1)
    else:
        x = x1
    N, Cin, H, W = x.shape
    Cout = w.shape[1]
    out = np.zeros((N, Cout, 2 * H, 2 * W), np.float32)
    for ih in range(H):
        for iw in range(W):
            for kh in range(4):
                for kw in range(4):
                    oh = 2 * ih + kh - 1
                    ow = 2 * iw + kw - 1
                    if 0 <= oh < 2 * H and 0 <= ow < 2 * W:
                        out[:, :, oh, ow] += np.einsum(
                            'nc,cd->nd', x[:, :, ih, iw], w[:, :, kh, kw])
    out += b[None, :, None, None]
    if not final:
        out = np.where(out >= 0, out, 0.2 * out)
    return out


if __name__ == "__main__":
    key = jax.random.PRNGKey(0)
    k1, k2, kw, kb = jax.random.split(key, 4)

    # x1 = decoder feature (odd spatial -> asymmetric F.pad split), x2 = skip.
    N, C1, C2 = 2, 4, 4
    H1 = W1 = 13
    H2 = W2 = 16
    in_ch, out_ch = C1 + C2, 8          # in_ch = channels after concat

    x1 = jax.random.normal(k1, (N, C1, H1, W1), jnp.float32)
    x2 = jax.random.normal(k2, (N, C2, H2, W2), jnp.float32)
    weight = jax.random.normal(kw, (in_ch, out_ch, 4, 4), jnp.float32) * 0.1
    bias = jax.random.normal(kb, (out_ch,), jnp.float32) * 0.1

    ref = _ref_up(x1, x2, weight, bias, concat=True, final=False)

    # f32, LeakyReLU, fused single-matmul path (row_tile=8 -> grid=(2,2))
    out = jax.block_until_ready(
        up_forward(x1, x2, weight, bias, concat=True, final=False, row_tile=8))
    assert out.shape == (N, out_ch, 2 * H2, 2 * W2), out.shape
    np.testing.assert_allclose(np.asarray(out), ref, rtol=5e-4, atol=5e-4)

    # f32, per-phase (4-matmul) path explicitly exercised
    out_p = jax.block_until_ready(
        up_forward(x1, x2, weight, bias, concat=True, final=False, row_tile=8,
                   fuse_phases=False))
    np.testing.assert_allclose(np.asarray(out_p), ref, rtol=5e-4, atol=5e-4)

    # f32, final (no activation) path
    out_f = jax.block_until_ready(
        up_forward(x1, x2, weight, bias, concat=True, final=True, row_tile=8))
    ref_f = _ref_up(x1, x2, weight, bias, concat=True, final=True)
    np.testing.assert_allclose(np.asarray(out_f), ref_f, rtol=5e-4, atol=5e-4)

    # bf16 activations/weights on the MXU, f32 accumulation (v6e/v7x path)
    out_b = jax.block_until_ready(
        up_forward(x1, x2, weight, bias, concat=True, final=False,
                   compute_dtype=jnp.bfloat16, row_tile=8))
    np.testing.assert_allclose(np.asarray(out_b), ref, rtol=5e-2, atol=5e-2)

    print("KERNEL_OK")
</pallas_src>

<mosaic_0001>
module attributes {stable_mosaic.version = 11 : i64} {
  func.func @_up_kernel(%arg0: i32, %arg1: i32, %arg2: memref<1x18x18x8xf32, #tpu.memory_space<vmem>>, %arg3: memref<72x32xf32, #tpu.memory_space<vmem>>, %arg4: memref<1x32xf32, #tpu.memory_space<vmem>>, %arg5: memref<1x8x16x32xf32, #tpu.memory_space<vmem>>) attributes {dimension_semantics = [#tpu.dimension_semantics<parallel>, #tpu.dimension_semantics<parallel>], iteration_bounds = array<i64: 2, 2>, scalar_prefetch = 0 : i64, scratch_operands = 0 : i64, tpu.core_type = #tpu.core_type<tc>, window_params = [{transform_indices = @transform_0, window_bounds = array<i64: 1, 18, 18, 8>}, {pipeline_mode = #tpu.pipeline_mode<synchronous>, transform_indices = @transform_1, window_bounds = array<i64: 72, 32>}, {pipeline_mode = #tpu.pipeline_mode<synchronous>, transform_indices = @transform_2, window_bounds = array<i64: 1, 32>}, {transform_indices = @transform_3, window_bounds = array<i64: 1, 8, 16, 32>}]} {
    %c8_i32 = arith.constant 8 : i32
    %0 = arith.muli %arg1, %c8_i32 : i32
    %1 = tpu.assume_multiple %0, 8 : i32
    %c1_i32 = arith.constant 1 : i32
    %2 = arith.addi %1, %c1_i32 : i32
    %c-1_i32 = arith.constant -1 : i32
    %3 = arith.addi %2, %c-1_i32 : i32
    %c0 = arith.constant 0 : index
    %4 = arith.index_cast %3 : i32 to index
    %c0_0 = arith.constant 0 : index
    %c0_1 = arith.constant 0 : index
    %5 = vector.load %arg2[%c0, %4, %c0_0, %c0_1] : memref<1x18x18x8xf32, #tpu.memory_space<vmem>>, vector<1x8x16x8xf32>
    %6 = vector.shape_cast %5 : vector<1x8x16x8xf32> to vector<8x16x8xf32>
    %7 = vector.shape_cast %6 : vector<8x16x8xf32> to vector<128x8xf32>
    %c1_i32_2 = arith.constant 1 : i32
    %8 = arith.addi %1, %c1_i32_2 : i32
    %c-1_i32_3 = arith.constant -1 : i32
    %9 = arith.addi %8, %c-1_i32_3 : i32
    %c0_4 = arith.constant 0 : index
    %10 = arith.index_cast %9 : i32 to index
    %c1 = arith.constant 1 : index
    %c0_5 = arith.constant 0 : index
    %11 = vector.load %arg2[%c0_4, %10, %c1, %c0_5] : memref<1x18x18x8xf32, #tpu.memory_space<vmem>>, vector<1x8x16x8xf32>
    %12 = vector.shape_cast %11 : vector<1x8x16x8xf32> to vector<8x16x8xf32>
    %13 = vector.shape_cast %12 : vector<8x16x8xf32> to vector<128x8xf32>
    %c1_i32_6 = arith.constant 1 : i32
    %14 = arith.addi %1, %c1_i32_6 : i32
    %c-1_i32_7 = arith.constant -1 : i32
    %15 = arith.addi %14, %c-1_i32_7 : i32
    %c0_8 = arith.constant 0 : index
    %16 = arith.index_cast %15 : i32 to index
    %c2 = arith.constant 2 : index
    %c0_9 = arith.constant 0 : index
    %17 = vector.load %arg2[%c0_8, %16, %c2, %c0_9] : memref<1x18x18x8xf32, #tpu.memory_space<vmem>>, vector<1x8x16x8xf32>
    %18 = vector.shape_cast %17 : vector<1x8x16x8xf32> to vector<8x16x8xf32>
    %19 = vector.shape_cast %18 : vector<8x16x8xf32> to vector<128x8xf32>
    %c1_i32_10 = arith.constant 1 : i32
    %20 = arith.addi %1, %c1_i32_10 : i32
    %c0_i32 = arith.constant 0 : i32
    %21 = arith.addi %20, %c0_i32 : i32
    %c0_11 = arith.constant 0 : index
    %22 = arith.index_cast %21 : i32 to index
    %c0_12 = arith.constant 0 : index
    %c0_13 = arith.constant 0 : index
    %23 = vector.load %arg2[%c0_11, %22, %c0_12, %c0_13] : memref<1x18x18x8xf32, #tpu.memory_space<vmem>>, vector<1x8x16x8xf32>
    %24 = vector.shape_cast %23 : vector<1x8x16x8xf32> to vector<8x16x8xf32>
    %25 = vector.shape_cast %24 : vector<8x16x8xf32> to vector<128x8xf32>
    %c1_i32_14 = arith.constant 1 : i32
    %26 = arith.addi %1, %c1_i32_14 : i32
    %c0_i32_15 = arith.constant 0 : i32
    %27 = arith.addi %26, %c0_i32_15 : i32
    %c0_16 = arith.constant 0 : index
    %28 = arith.index_cast %27 : i32 to index
    %c1_17 = arith.constant 1 : index
    %c0_18 = arith.constant 0 : index
    %29 = vector.load %arg2[%c0_16, %28, %c1_17, %c0_18] : memref<1x18x18x8xf32, #tpu.memory_space<vmem>>, vector<1x8x16x8xf32>
    %30 = vector.shape_cast %29 : vector<1x8x16x8xf32> to vector<8x16x8xf32>
    %31 = vector.shape_cast %30 : vector<8x16x8xf32> to vector<128x8xf32>
    %c1_i32_19 = arith.constant 1 : i32
    %32 = arith.addi %1, %c1_i32_19 : i32
    %c0_i32_20 = arith.constant 0 : i32
    %33 = arith.addi %32, %c0_i32_20 : i32
    %c0_21 = arith.constant 0 : index
    %34 = arith.index_cast %33 : i32 to index
    %c2_22 = arith.constant 2 : index
    %c0_23 = arith.constant 0 : index
    %35 = vector.load %arg2[%c0_21, %34, %c2_22, %c0_23] : memref<1x18x18x8xf32, #tpu.memory_space<vmem>>, vector<1x8x16x8xf32>
    %36 = vector.shape_cast %35 : vector<1x8x16x8xf32> to vector<8x16x8xf32>
    %37 = vector.shape_cast %36 : vector<8x16x8xf32> to vector<128x8xf32>
    %c1_i32_24 = arith.constant 1 : i32
    %38 = arith.addi %1, %c1_i32_24 : i32
    %c1_i32_25 = arith.constant 1 : i32
    %39 = arith.addi %38, %c1_i32_25 : i32
    %c0_26 = arith.constant 0 : index
    %40 = arith.index_cast %39 : i32 to index
    %c0_27 = arith.constant 0 : index
    %c0_28 = arith.constant 0 : index
    %41 = vector.load %arg2[%c0_26, %40, %c0_27, %c0_28] : memref<1x18x18x8xf32, #tpu.memory_space<vmem>>, vector<1x8x16x8xf32>
    %42 = vector.shape_cast %41 : vector<1x8x16x8xf32> to vector<8x16x8xf32>
    %43 = vector.shape_cast %42 : vector<8x16x8xf32> to vector<128x8xf32>
    %c1_i32_29 = arith.constant 1 : i32
    %44 = arith.addi %1, %c1_i32_29 : i32
    %c1_i32_30 = arith.constant 1 : i32
    %45 = arith.addi %44, %c1_i32_30 : i32
    %c0_31 = arith.constant 0 : index
    %46 = arith.index_cast %45 : i32 to index
    %c1_32 = arith.constant 1 : index
    %c0_33 = arith.constant 0 : index
    %47 = vector.load %arg2[%c0_31, %46, %c1_32, %c0_33] : memref<1x18x18x8xf32, #tpu.memory_space<vmem>>, vector<1x8x16x8xf32>
    %48 = vector.shape_cast %47 : vector<1x8x16x8xf32> to vector<8x16x8xf32>
    %49 = vector.shape_cast %48 : vector<8x16x8xf32> to vector<128x8xf32>
    %c1_i32_34 = arith.constant 1 : i32
    %50 = arith.addi %1, %c1_i32_34 : i32
    %c1_i32_35 = arith.constant 1 : i32
    %51 = arith.addi %50, %c1_i32_35 : i32
    %c0_36 = arith.constant 0 : index
    %52 = arith.index_cast %51 : i32 to index
    %c2_37 = arith.constant 2 : index
    %c0_38 = arith.constant 0 : index
    %53 = vector.load %arg2[%c0_36, %52, %c2_37, %c0_38] : memref<1x18x18x8xf32, #tpu.memory_space<vmem>>, vector<1x8x16x8xf32>
    %54 = vector.shape_cast %53 : vector<1x8x16x8xf32> to vector<8x16x8xf32>
    %55 = vector.shape_cast %54 : vector<8x16x8xf32> to vector<128x8xf32>
    %56 = tpu.concatenate %7, %13, %19, %25, %31, %37, %43, %49, %55 in 1 : vector<128x8xf32>, vector<128x8xf32>, vector<128x8xf32>, vector<128x8xf32>, vector<128x8xf32>, vector<128x8xf32>, vector<128x8xf32>, vector<128x8xf32>, vector<128x8xf32> -> vector<128x72xf32>
    %c0_39 = arith.constant 0 : index
    %c0_40 = arith.constant 0 : index
    %57 = vector.load %arg3[%c0_39, %c0_40] : memref<72x32xf32, #tpu.memory_space<vmem>>, vector<72x32xf32>
    %cst = arith.constant dense<0.000000e+00> : vector<128x32xf32>
    %58 = tpu.matmul %56, %57, %cst {dimension_numbers = #tpu.dot_dimension_numbers<[1], [0], [0], [1], [0, 0, 1, 1], [], []>} : vector<128x72xf32>, vector<72x32xf32>, vector<128x32xf32> -> vector<128x32xf32>
    %c0_41 = arith.constant 0 : index
    %c0_42 = arith.constant 0 : index
    %59 = vector.load %arg4[%c0_41, %c0_42] : memref<1x32xf32, #tpu.memory_space<vmem>>, vector<1x32xf32>
    %60 = vector.shape_cast %59 : vector<1x32xf32> to vector<32xf32>
    %61 = vector.shape_cast %60 : vector<32xf32> to vector<1x32xf32>
    %62 = vector.broadcast %61 : vector<1x32xf32> to vector<128x32xf32>
    %63 = arith.addf %58, %62 : vector<128x32xf32>
    %cst_43 = arith.constant 0.000000e+00 : f32
    %64 = vector.broadcast %cst_43 : f32 to vector<128x32xf32>
    %65 = arith.cmpf oge, %63, %64 : vector<128x32xf32>
    %cst_44 = arith.constant 2.000000e-01 : f32
    %66 = vector.broadcast %cst_44 : f32 to vector<128x32xf32>
    %67 = arith.mulf %66, %63 : vector<128x32xf32>
    %68 = arith.select %65, %63, %67 : vector<128x32xi1>, vector<128x32xf32>
    %69 = vector.shape_cast %68 : vector<128x32xf32> to vector<8x16x32xf32>
    %c0_45 = arith.constant 0 : index
    %c0_46 = arith.constant 0 : index
    %c0_47 = arith.constant 0 : index
    %c0_48 = arith.constant 0 : index
    %70 = vector.load %arg5[%c0_45, %c0_46, %c0_47, %c0_48] : memref<1x8x16x32xf32, #tpu.memory_space<vmem>>, vector<1x8x16x32xf32>
    %71 = vector.shape_cast %70 : vector<1x8x16x32xf32> to vector<8x16x32xf32>
    %72 = vector.shape_cast %69 : vector<8x16x32xf32> to vector<1x8x16x32xf32>
    tpu.vector_store %arg5[%c0_45, %c0_46, %c0_47, %c0_48], %72 {strides = array<i32>} : memref<1x8x16x32xf32, #tpu.memory_space<vmem>>, vector<1x8x16x32xf32>,
    return
  }
  func.func @transform_0(%arg0: i32, %arg1: i32) -> (i32, i32, i32, i32) {
    %c0_i32 = arith.constant 0 : i32
    %c0_i32_0 = arith.constant 0 : i32
    %c0_i32_1 = arith.constant 0 : i32
    %c0_i32_2 = arith.constant 0 : i32
    return %arg0, %c0_i32, %c0_i32_0, %c0_i32_1 : i32, i32, i32, i32
  }
  func.func @transform_1(%arg0: i32, %arg1: i32) -> (i32, i32) {
    %c0_i32 = arith.constant 0 : i32
    %c0_i32_0 = arith.constant 0 : i32
    %c0_i32_1 = arith.constant 0 : i32
    return %c0_i32, %c0_i32_0 : i32, i32
  }
  func.func @transform_2(%arg0: i32, %arg1: i32) -> (i32, i32) {
    %c0_i32 = arith.constant 0 : i32
    %c0_i32_0 = arith.constant 0 : i32
    %c0_i32_1 = arith.constant 0 : i32
    return %c0_i32, %c0_i32_0 : i32, i32
  }
  func.func @transform_3(%arg0: i32, %arg1: i32) -> (i32, i32, i32, i32) {
    %c0_i32 = arith.constant 0 : i32
    %c0_i32_0 = arith.constant 0 : i32
    %c0_i32_1 = arith.constant 0 : i32
    return %arg0, %arg1, %c0_i32, %c0_i32_0 : i32, i32, i32, i32
  }
}

</mosaic_0001>

<bundles_post_ra>
// kernel: tpu_custom_call.1
= control target key start
LH: loop header
LB: loop body
LE: loop exit
PB: predicated region body
PF: predicated region fallthrough
CT: control target
= control target key end

     0   :  { %8 = vsyncpa [#allocation3], 0  ;;  %s2581_s0 = inlined_call_operand.vmem [shape: f32[2,18,18,8], index: 0, kind: input, shape index: {}]   ;;  %s2582_s1 = inlined_call_operand.vmem [shape: f32[72,32], index: 1, kind: input, shape index: {}]   ;;  %s2583_s2 = inlined_call_operand.vmem [shape: f32[1,32], index: 2, kind: input, shape index: {}]   ;;  %s2584_s3 = inlined_call_operand.hbm [shape: f32[2,16,16,32], index: 3, kind: output, shape index: {}]  }
   0x1   :  { %10 = vsyncpa [#allocation3 + $0x1], 0  ;;  %s1796_s12 = smov 0   ;;  %s1798_s13 = smov 0  }
   0x2   :  { %s1800_s14 = smov 0   ;;  %s1802_s15 = smov 0  }
   0x3   :  { %s1804_s16 = smov 0   ;;  %s1806_s17 = smov 0  }
   0x4   :  { %s1808_s18 = smov 0   ;;  %s1810_s19 = smov 0  }
   0x5 LB: > { %s1362_s20 = sadd.s32 4294967295, %s1764_s19   ;;  %s1363_s21 = sadd.s32 4294967294, %s1764_s19   ;;  %s1764_s19 = sphi %s1810_s19, %s16_s19   ;;  %s1760_s18 = sphi %s1808_s18, %s2611_s18   ;;  %s1756_s17 = sphi %s1806_s17, %s2610_s17   ;;  %s1752_s16 = sphi %s1804_s16, %s2609_s16   ;;  %s1748_s15 = sphi %s1802_s15, %s2608_s15   ;;  %s1744_s14 = sphi %s1800_s14, %s2607_s14   ;;  %s1740_s13 = sphi %s1798_s13, %s2606_s13   ;;  %s1736_s12 = sphi %s1796_s12, %s2605_s12  }
   0x6   : > { %s25_s22 = sadd.s32 1, %s1756_s17  ;;  %s28_s23 = sadd.s32 1, %s1760_s18 }
   0x7   : > { %p26_p0 = scmp.ge.s32.totalorder %s25_s22, 2  ;;  %p115_p1 = scmp.ne.s32.totalorder %s1744_s14, %s1740_s13 }
   0x8   : > { %p116_p2 = scmp.eq.s32.totalorder %s1362_s20, 3  ;;  %p121_p5 = scmp.ne.s32.totalorder %s1740_s13, %s1736_s12 }
   0x9   : > { %s2613_s22 = smov (%p26_p0, %s25_s22), 0  ;;  %s2615_s23 = smov (!%p26_p0, %s28_s23), %s1760_s18 }
   0xa   : > { %s101_s24 = ssub.s32 %s1756_s17, %s2613_s22  ;;  %p1847_p3 = por %p116_p2, %p115_p1 }
   0xb   : > { %p30_p4 = scmp.ge.s32.totalorder %s2615_s23, 2  ;;  %p122_p6 = scmp.eq.s32.totalorder %s1363_s21, 3 }
   0xc   : > { %p1366_p7 = scmp.ge.s32.totalorder %s1764_s19, 1  ;;  %p154_p9 = scmp.lt.s32.totalorder %s1764_s19, 5 }
   0xd   : > { %s2617_s23 = smov (%p30_p4, %s2615_s23), 0  ;;  %p1856_p8 = por %p122_p6, %p121_p5 }
   0xe   : > { %s100_s27 = ssub.s32 %s1760_s18, %s2617_s23  ;;  %s105_s28 = sadd.s32 1, %s1744_s14 }
   0xf   : > { %s102_s29 = sor.u32 %s101_s24, %s100_s27  ;;  %p155_p10 = pnand %p1366_p7, %p154_p9 }
  0x10   : > { %p103_p11 = scmp.eq.s32.totalorder %s102_s29, 0 }
  0x11   : > { %158 = sbr.rel (%p155_p10) target bundleno = 634 (0x27a), region = 32 }
  0x12   : > { %s1865_s30 = scalar_select %p103_p11, %s1744_s14, %s105_s28  }
  0x18   : > { %p178_p12 = scmp.lt.s32.totalorder %s1752_s16, 1  ;;  %s1370_s5 = smul.u32 192, %s1748_s15  ;;  %v985_v26 = vld [vmem:[%s2582_s1] sm:$0xff]  ;;  %v986_v27 = vld [vmem:[%s2582_s1 + $0x8] sm:$0xff]  ;;  %v987_v29 = vld [vmem:[%s2582_s1 + $0x10] sm:$0xff]  ;;  %vm849_vm0 = vcmask 64512  }
  0x19   : > { %s1766_s11 = smov 8   ;;  %s1767_s20 = smov 16   ;;  %v1563_v28 = vpack.c.bf16 %v986_v27, %v985_v26  ;;  %v988_v30 = vld [vmem:[%s2582_s1 + $0x18] sm:$0xff]  ;;  %v989_v32 = vld [vmem:[%s2582_s1 + $0x20] sm:$0xff]  ;;  %v990_v33 = vld [vmem:[%s2582_s1 + $0x28] sm:$0xff]  ;;  %vm866_vm1 = vcmask 130048  }
  0x1a   : > { %s179_s4 = scalar_select %p178_p12, %s1752_s16, 1  ;;  %v1567_v31 = vpack.c.bf16 %v988_v30, %v987_v29  ;;  %v1571_v36 = vpack.c.bf16 %v990_v33, %v989_v32  ;;  %v991_v37 = vld [vmem:[%s2582_s1 + $0x30] sm:$0xff]  ;;  %v992_v38 = vld [vmem:[%s2582_s1 + $0x38] sm:$0xff]  ;;  %v993_v42 = vld [vmem:[%s2582_s1 + $0x40] sm:$0xff]  ;;  %vm883_vm2 = vcmask 195584   ;;  %vm900_vm3 = vcmask 261120  }
  0x1b   : > { %s2585_s21 = smov 24   ;;  %s1769_s24 = smov 32   ;;  %1564 = vmatprep.subr.bf16.mxu0 %v1563_v28  ;;  %1579 = vmatprep.subr.bf16.mxu1 %v1563_v28  ;;  %v1575_v41 = vpack.c.bf16 %v992_v38, %v991_v37  ;;  %vm917_vm4 = vcmask 326656   ;;  %vm934_vm5 = vcmask 392192   ;;  %vm951_vm6 = vcmask 457728  }
  0x1c   : > { %s1589_s6 = smul.u32 432, %s179_s4  ;;  %s1770_s27 = smov 40   ;;  %1566 = vmatpush3.bf16.msra.mxu0 %v1563_v28  ;;  %1584 = vmatpush3.bf16.msra.mxu1 %v1563_v28  ;;  %vm968_vm7 = vcmask 523264   ;;  %vm1001_vm8 = vcmask 588800  }
  0x1d   : > { %s1771_s28 = smov 48   ;;  %s1772_s7 = smov 56   ;;  %1568 = vmatprep.subr.bf16.mxu0 %v1567_v31  ;;  %1580 = vmatprep.subr.bf16.mxu1 %v1567_v31 }
  0x1e   : > { %s182_s9 = scalar_lea.vmem %s2581_s0, %s1589_s6  ;;  %s1491_s29 = sshll.u32 %s1752_s16, 5 }
  0x1f   : > { %s1873_s10 = scalar_lea.vmem %s182_s9, %s1370_s5  ;;  %s2597_s9 = smov 24  }
  0x20   : > { %v204_v0 = vld [vmem:[%s1873_s10 + $0x9] sm:$0xff]  ;;  %v203_v1 = vld [vmem:[%s1873_s10 + $0x1] sm:$0xff]  ;;  %v1904_v8 = vld [vmem:[%s1873_s10 + $0x78] sm:$0xff]  ;;  %1570 = vmatpush3.bf16.msra.mxu0 %v1567_v31  ;;  %1585 = vmatpush3.bf16.msra.mxu1 %v1567_v31 }
  0x21   : > { %355 = vrot.lane.b32.xlu1 %v204_v0, %s1766_s11  ;;  %353 = vrot.lane.b32.xlu0 %v203_v1, %s1766_s11  ;;  %v1880_v2 = vld [vmem:[%s1873_s10 + $0x69] sm:$0xff]  ;;  %v1883_v3 = vld [vmem:[%s1873_s10 + $0x61] sm:$0xff] }
  0x22   : > { %v1890_v4 = vld [vmem:[%s1873_s10 + $0x62] sm:$0xff]  ;;  %v1897_v6 = vld [vmem:[%s1873_s10 + $0x6a] sm:$0xff]  ;;  %v1907_v9 = vld [vmem:[%s1873_s10 + $0x18] sm:$0xff]  ;;  %1572 = vmatprep.subr.bf16.mxu0 %v1571_v36  ;;  %1581 = vmatprep.subr.bf16.mxu1 %v1571_v36 }
  0x23   : > { %v219_v5 = vld [vmem:[%s1873_s10 + $0x2] sm:$0xff]  ;;  %v220_v7 = vld [vmem:[%s1873_s10 + $0xa] sm:$0xff]  ;;  %v1924_v12 = vld [vmem:[%s1873_s10 + $0x79] sm:$0xff] }
  0x24   : > { %v1914_v10 = vld [vmem:[%s1873_s10 + $0x80] sm:$0xff]  ;;  %v1961_v20 = vld [vmem:[%s1873_s10 + $0x90] sm:$0xff]  ;;  %v1978_v22 = vld [vmem:[%s1873_s10 + $0x98] sm:$0xff]  ;;  %1574 = vmatpush3.bf16.msra.mxu0 %v1571_v36  ;;  %1586 = vmatpush3.bf16.msra.mxu1 %v1571_v36 }
  0x25   : > { %371 = vrot.lane.b32.xlu1 %v1880_v2, %s1766_s11  ;;  %369 = vrot.lane.b32.xlu0 %v1883_v3, %s1766_s11  ;;  %v1917_v11 = vld [vmem:[%s1873_s10 + $0x20] sm:$0xff]  ;;  %v1964_v21 = vld [vmem:[%s1873_s10 + $0x30] sm:$0xff] }
  0x26   : > { %v1389_v13 = vld [vmem:[%s1873_s10 + $0x19] sm:$0xff]  ;;  %v1934_v14 = vld [vmem:[%s1873_s10 + $0x81] sm:$0xff]  ;;  %v1447_v24 = vld [vmem:[%s1873_s10 + $0x91] sm:$0xff]  ;;  %1576 = vmatprep.subr.bf16.mxu0 %v1575_v41  ;;  %1582 = vmatprep.subr.bf16.mxu1 %v1575_v41 }
  0x27   : > { %v1390_v15 = vld [vmem:[%s1873_s10 + $0x21] sm:$0xff]  ;;  %v1981_v23 = vld [vmem:[%s1873_s10 + $0x38] sm:$0xff]  ;;  %v2077_v53 = vld [vmem:[%s1873_s10 + $0xb0] sm:$0xff] }
  0x28   : > { %v1941_v16 = vld [vmem:[%s1873_s10 + $0x7a] sm:$0xff]  ;;  %v1954_v18 = vld [vmem:[%s1873_s10 + $0x82] sm:$0xff]  ;;  %v1439_v25 = vld [vmem:[%s1873_s10 + $0x31] sm:$0xff]  ;;  %1578 = vmatpush3.bf16.msra.mxu0 %v1575_v41  ;;  %1587 = vmatpush3.bf16.msra.mxu1 %v1575_v41  ;;  %2598 = vst [vmem:[#allocation8_spill] sm:$0xff] %v2077_v53 }
  0x29   : > { %433 = vrot.lane.b32.xlu1 %v1890_v4, %s1767_s20  ;;  %417 = vrot.lane.b32.xlu0 %v219_v5, %s1767_s20  ;;  %v1405_v17 = vld [vmem:[%s1873_s10 + $0x1a] sm:$0xff]  ;;  %2594 = vst [vmem:[#allocation5_spill] sm:$0xff] %v1954_v18  ;;  %v1406_v19 = vld [vmem:[%s1873_s10 + $0x22] sm:$0xff] }
  0x2a   : > { %v1448_v34 = vld [vmem:[%s1873_s10 + $0x99] sm:$0xff]  ;;  %1537 = vmatprep.subr.mxu0 %v993_v42  ;;  %1583 = vmatprep.subr.mxu1 %v993_v42  ;;  %v2049_v45 = vld [vmem:[%s1873_s10 + $0xa8] sm:$0xff]  ;;  %v2080_v54 = vld [vmem:[%s1873_s10 + $0x50] sm:$0xff] }
  0x2b   : > { %v1440_v35 = vld [vmem:[%s1873_s10 + $0x39] sm:$0xff]  ;;  %2595 = vst [vmem:[#allocation6_spill] sm:$0xff] %v2049_v45  ;;  %v2052_v46 = vld [vmem:[%s1873_s10 + $0x48] sm:$0xff]  ;;  %2599 = vst [vmem:[#allocation9_spill] sm:$0xff] %v2080_v54 }
  0x2c   : > { %v1463_v39 = vld [vmem:[%s1873_s10 + $0x92] sm:$0xff]  ;;  %1538 = vmatpush3.msra.mxu0 %v993_v42  ;;  %1588 = vmatpush3.msra.mxu1 %v993_v42  ;;  %v1464_v43 = vld [vmem:[%s1873_s10 + $0x9a] sm:$0xff]  ;;  %2596 = vst [vmem:[#allocation7_spill] sm:$0xff] %v2052_v46  ;;  %v1449_v57 = vld [vmem:[%s1873_s10 + $0xa9] sm:$0xff] }
  0x2d   : > { %435 = vrot.lane.b32.xlu1 %v1897_v6, %s1767_s20  ;;  %419 = vrot.lane.b32.xlu0 %v220_v7, %s1767_s20  ;;  %v1455_v40 = vld [vmem:[%s1873_s10 + $0x32] sm:$0xff]  ;;  %v1456_v44 = vld [vmem:[%s1873_s10 + $0x3a] sm:$0xff] }
  0x2e   : > { %v1441_v58 = vld [vmem:[%s1873_s10 + $0x49] sm:$0xff]  ;;  %v1450_v1 = vld [vmem:[%s1873_s10 + $0xb1] sm:$0xff]  ;;  %v1435_v41 = vld [vmem:[%s1873_s10 + $0xc0] sm:$0xff] }
  0x2f   : > { %v1442_v5 = vld [vmem:[%s1873_s10 + $0x51] sm:$0xff] }
  0x30   : > { %v1466_v31 = vld [vmem:[%s1873_s10 + $0xb2] sm:$0xff] }
  0x31   : > { %497 = vrot.lane.b32.xlu1 %v1904_v8, %s2585_s21  ;;  %481 = vrot.lane.b32.xlu0 %v1907_v9, %s2585_s21  ;;  %v1458_v32 = vld [vmem:[%s1873_s10 + $0x52] sm:$0xff] }
  0x35   : > { %499 = vrot.lane.b32.xlu1 %v1914_v10, %s2585_s21  ;;  %483 = vrot.lane.b32.xlu0 %v1917_v11, %s2585_s21 }
  0x39   : > { %561 = vrot.lane.b32.xlu1 %v1924_v12, %s1769_s24  ;;  %545 = vrot.lane.b32.xlu0 %v1389_v13, %s1769_s24 }
  0x3d   : > { %373 = vrot.lane.b32.xlu1 %v1924_v12, %s1766_s11  ;;  %357 = vrot.lane.b32.xlu0 %v1389_v13, %s1766_s11 }
  0x41   : > { %563 = vrot.lane.b32.xlu1 %v1934_v14, %s1769_s24  ;;  %547 = vrot.lane.b32.xlu0 %v1390_v15, %s1769_s24 }
  0x45   : > { %625 = vrot.lane.b32.xlu1 %v1941_v16, %s1770_s27  ;;  %609 = vrot.lane.b32.xlu0 %v1405_v17, %s1770_s27 }
  0x49   : > { %375 = vrot.lane.b32.xlu1 %v1934_v14, %s1766_s11  ;;  %359 = vrot.lane.b32.xlu0 %v1390_v15, %s1766_s11  ;;  %v1465_v15 = vld [vmem:[%s1873_s10 + $0xaa] sm:$0xff] }
  0x4d   : > { %437 = vrot.lane.b32.xlu1 %v1941_v16, %s1767_s20  ;;  %421 = vrot.lane.b32.xlu0 %v1405_v17, %s1767_s20  ;;  %v1457_v17 = vld [vmem:[%s1873_s10 + $0x4a] sm:$0xff] }
  0x51   : > { %627 = vrot.lane.b32.xlu1 %v1954_v18, %s1770_s27  ;;  %611 = vrot.lane.b32.xlu0 %v1406_v19, %s1770_s27 }
  0x55   : > { %689 = vrot.lane.b32.xlu1 %v1961_v20, %s1771_s28  ;;  %673 = vrot.lane.b32.xlu0 %v1964_v21, %s1771_s28 }
  0x59   : > { %439 = vrot.lane.b32.xlu1 %v1954_v18, %s1767_s20  ;;  %423 = vrot.lane.b32.xlu0 %v1406_v19, %s1767_s20 }
  0x5d   : > { %501 = vrot.lane.b32.xlu1 %v1961_v20, %s2585_s21  ;;  %485 = vrot.lane.b32.xlu0 %v1964_v21, %s2585_s21 }
  0x61   : > { %691 = vrot.lane.b32.xlu1 %v1978_v22, %s1771_s28  ;;  %675 = vrot.lane.b32.xlu0 %v1981_v23, %s1771_s28 }
  0x65   : > { %753 = vrot.lane.b32.xlu1 %v1447_v24, %s1772_s7  ;;  %737 = vrot.lane.b32.xlu0 %v1439_v25, %s1772_s7 }
  0x69   : > { %503 = vrot.lane.b32.xlu1 %v1978_v22, %s2585_s21  ;;  %487 = vrot.lane.b32.xlu0 %v1981_v23, %s2585_s21  ;;  %s1773_s21 = smov 64  }
  0x6d   : > { %565 = vrot.lane.b32.xlu1 %v1447_v24, %s1769_s24  ;;  %549 = vrot.lane.b32.xlu0 %v1439_v25, %s1769_s24 }
  0x71   : > { %755 = vrot.lane.b32.xlu1 %v1448_v34, %s1772_s7  ;;  %739 = vrot.lane.b32.xlu0 %v1440_v35, %s1772_s7 }
  0x75   : > { %817 = vrot.lane.b32.xlu1 %v1463_v39, %s1773_s21  ;;  %801 = vrot.lane.b32.xlu0 %v1455_v40, %s1773_s21 }
  0x79   : > { %377 = vrot.lane.b32.xlu1 %v1447_v24, %s1766_s11  ;;  %361 = vrot.lane.b32.xlu0 %v1439_v25, %s1766_s11 }
  0x7d   : > { %567 = vrot.lane.b32.xlu1 %v1448_v34, %s1769_s24  ;;  %551 = vrot.lane.b32.xlu0 %v1440_v35, %s1769_s24 }
  0x81   : > { %629 = vrot.lane.b32.xlu1 %v1463_v39, %s1770_s27  ;;  %613 = vrot.lane.b32.xlu0 %v1455_v40, %s1770_s27 }
  0x85   : > { %819 = vrot.lane.b32.xlu1 %v1464_v43, %s1773_s21  ;;  %803 = vrot.lane.b32.xlu0 %v1456_v44, %s1773_s21 }
  0x89   : > { %379 = vrot.lane.b32.xlu1 %v1448_v34, %s1766_s11  ;;  %363 = vrot.lane.b32.xlu0 %v1440_v35, %s1766_s11 }
  0x8d   : > { %441 = vrot.lane.b32.xlu1 %v1463_v39, %s1767_s20  ;;  %425 = vrot.lane.b32.xlu0 %v1455_v40, %s1767_s20 }
  0x91   : > { %631 = vrot.lane.b32.xlu1 %v1464_v43, %s1770_s27  ;;  %615 = vrot.lane.b32.xlu0 %v1456_v44, %s1770_s27 }
  0x93   : > { %v2054_v47 = vpop.permute.xlu1 %355  ;;  %v2056_v48 = vpop.permute.xlu0 %353 }
  0x95   : > { %693 = vrot.lane.b32.xlu1 %v2049_v45, %s1771_s28  ;;  %677 = vrot.lane.b32.xlu0 %v2052_v46, %s1771_s28 }
  0x97   : > { %v2062_v49 = vpop.permute.xlu1 %371  ;;  %v2064_v50 = vpop.permute.xlu0 %369 }
  0x99   : > { %443 = vrot.lane.b32.xlu1 %v1464_v43, %s1767_s20  ;;  %427 = vrot.lane.b32.xlu0 %v1456_v44, %s1767_s20  ;;  %v195_v44 = vld [vmem:[%s1873_s10 + $0x60] sm:$0xff] }
  0x9b   : > { %v2068_v51 = vpop.permute.xlu1 %433  ;;  %v2070_v52 = vpop.permute.xlu0 %417 }
  0x9d   : > { %505 = vrot.lane.b32.xlu1 %v2049_v45, %s2597_s9  ;;  %489 = vrot.lane.b32.xlu0 %v2052_v46, %s2597_s9 }
  0x9f   : > { %v2082_v55 = vpop.permute.xlu1 %435  ;;  %v2084_v56 = vpop.permute.xlu0 %419 }
  0xa1   : > { %695 = vrot.lane.b32.xlu1 %v2077_v53, %s1771_s28  ;;  %679 = vrot.lane.b32.xlu0 %v2080_v54, %s1771_s28 }
  0xa3   : > { %v2092_v59 = vpop.permute.xlu1 %497  ;;  %v2094_v60 = vpop.permute.xlu0 %481 }
  0xa5   : > { %757 = vrot.lane.b32.xlu1 %v1449_v57, %s1772_s7  ;;  %741 = vrot.lane.b32.xlu0 %v1441_v58, %s1772_s7 }
  0xa7   : > { %v2098_v61 = vpop.permute.xlu1 %499  ;;  %v2100_v62 = vpop.permute.xlu0 %483 }
  0xa9   : > { %507 = vrot.lane.b32.xlu1 %v2077_v53, %s2597_s9  ;;  %491 = vrot.lane.b32.xlu0 %v2080_v54, %s2597_s9  ;;  %v1436_v53 = vld [vmem:[%s1873_s10 + $0xc8] sm:$0xff] }
  0xab   : > { %v2106_v63 = vpop.permute.xlu1 %561  ;;  %v2108_v0 = vpop.permute.xlu0 %545 }
  0xad   : > { %569 = vrot.lane.b32.xlu1 %v1449_v57, %s1769_s24  ;;  %553 = vrot.lane.b32.xlu0 %v1441_v58, %s1769_s24 }
  0xaf   : > { %v374_v7 = vpop.permute.xlu1 %373  ;;  %v358_v13 = vpop.permute.xlu0 %357 }
  0xb1   : > { %759 = vrot.lane.b32.xlu1 %v1450_v1, %s1772_s7  ;;  %743 = vrot.lane.b32.xlu0 %v1442_v5, %s1772_s7 }
  0xb3   : > { %v2118_v19 = vpop.permute.xlu1 %563  ;;  %v2120_v24 = vpop.permute.xlu0 %547 }
  0xb5   : > { %821 = vrot.lane.b32.xlu1 %v1465_v15, %s1773_s21  ;;  %805 = vrot.lane.b32.xlu0 %v1457_v17, %s1773_s21 }
  0xb7   : > { %v2124_v25 = vpop.permute.xlu1 %625  ;;  %v2126_v26 = vpop.permute.xlu0 %609 }
  0xb9   : > { %381 = vrot.lane.b32.xlu1 %v1449_v57, %s1766_s11  ;;  %365 = vrot.lane.b32.xlu0 %v1441_v58, %s1766_s11 }
  0xbb   : > { %v2130_v27 = vpop.permute.xlu1 %375  ;;  %v2132_v28 = vpop.permute.xlu0 %359 }
  0xbd   : > { %571 = vrot.lane.b32.xlu1 %v1450_v1, %s1769_s24  ;;  %555 = vrot.lane.b32.xlu0 %v1442_v5, %s1769_s24 }
  0xbf   : > { %v438_v29 = vpop.permute.xlu1 %437  ;;  %v422_v30 = vpop.permute.xlu0 %421 }
  0xc1   : > { %633 = vrot.lane.b32.xlu1 %v1465_v15, %s1770_s27  ;;  %617 = vrot.lane.b32.xlu0 %v1457_v17, %s1770_s27 }
  0xc3   : > { %v2140_v33 = vpop.permute.xlu1 %627  ;;  %v2142_v34 = vpop.permute.xlu0 %611 }
  0xc5   : > { %823 = vrot.lane.b32.xlu1 %v1466_v31, %s1773_s21  ;;  %807 = vrot.lane.b32.xlu0 %v1458_v32, %s1773_s21 }
  0xc7   : > { %v2146_v35 = vpop.permute.xlu1 %689  ;;  %v2148_v36 = vpop.permute.xlu0 %673 }
  0xc9   : > { %383 = vrot.lane.b32.xlu1 %v1450_v1, %s1766_s11  ;;  %367 = vrot.lane.b32.xlu0 %v1442_v5, %s1766_s11 }
  0xcb   : > { %v2152_v37 = vpop.permute.xlu1 %439  ;;  %v2154_v38 = vpop.permute.xlu0 %423 }
  0xcd   : > { %445 = vrot.lane.b32.xlu1 %v1465_v15, %s1767_s20  ;;  %429 = vrot.lane.b32.xlu0 %v1457_v17, %s1767_s20  ;;  %v860_v15 = vsel %vm849_vm0, %v1904_v8, %v374_v7  ;;  %v852_v17 = vsel %vm849_vm0, %v1907_v9, %v358_v13  ;;  %v196_v9 = vld [vmem:[%s1873_s10 + $0x68] sm:$0xff] }
  0xce   : > { %v869_v54 = vsel %vm866_vm1, %v852_v17, %v422_v30  ;;  %v858_v30 = vsel %vm849_vm0, %v195_v44, %v2064_v50 }
  0xcf   : > { %v502_v39 = vpop.permute.xlu1 %501  ;;  %v486_v40 = vpop.permute.xlu0 %485 }
  0xd0   : > { %v886_v7 = vsel %vm883_vm2, %v869_v54, %v486_v40  ;;  %v875_v54 = vsel %vm866_vm1, %v858_v30, %v2068_v51 }
  0xd1   : > { %635 = vrot.lane.b32.xlu1 %v1466_v31, %s1770_s27  ;;  %619 = vrot.lane.b32.xlu0 %v1458_v32, %s1770_s27 }
  0xd3   : > { %v2161_v42 = vpop.permute.xlu1 %691  ;;  %v2163_v43 = vpop.permute.xlu0 %675 }
  0xd5   : > { %697 = vrot.lane.b32.xlu1 %v1435_v41, %s1771_s28  ;;  %681 = vrot.lane.b32.xlu0 %v195_v44, %s1771_s28 }
  0xd7   : > { %v754_v57 = vpop.permute.xlu1 %753  ;;  %v738_v58 = vpop.permute.xlu0 %737 }
  0xd9   : > { %447 = vrot.lane.b32.xlu1 %v1466_v31, %s1767_s20  ;;  %431 = vrot.lane.b32.xlu0 %v1458_v32, %s1767_s20  ;;  %v187_v31 = vld [vmem:[%s1873_s10] sm:$0xff]  ;;  %v877_v32 = vsel %vm866_vm1, %v860_v15, %v438_v29  ;;  %s1774_s20 = smov [#allocation2]  }
  0xda   : > { %v894_v46 = vsel %vm883_vm2, %v877_v32, %v502_v39  ;;  %v850_v29 = vsel %vm849_vm0, %v187_v31, %v2056_v48 }
  0xdb   : > { %v2170_v1 = vpop.permute.xlu1 %503  ;;  %v2172_v5 = vpop.permute.xlu0 %487 }
  0xdd   : > { %509 = vrot.lane.b32.xlu1 %v1435_v41, %s2597_s9  ;;  %493 = vrot.lane.b32.xlu0 %v195_v44, %s2597_s9 }
  0xdf   : > { %v566_v45 = vpop.permute.xlu1 %565  ;;  %v550_v18 = vpop.permute.xlu0 %549 }
  0xe0   : > { %v2188_v13 = vsel %vm900_vm3, %v894_v46, %v566_v45  ;;  %v2191_v41 = vsel %vm900_vm3, %v886_v7, %v550_v18  ;;  %v867_v45 = vsel %vm866_vm1, %v850_v29, %v2070_v52  ;;  %v1451_v46 = vld [vmem:[%s1873_s10 + $0xc1] sm:$0xff]  ;;  %v892_v18 = vsel %vm883_vm2, %v875_v54, %v2092_v59  ;;  %v1452_v7 = vld [vmem:[%s1873_s10 + $0xc9] sm:$0xff] }
  0xe1   : > { %699 = vrot.lane.b32.xlu1 %v1436_v53, %s1771_s28  ;;  %683 = vrot.lane.b32.xlu0 %v196_v9, %s1771_s28  ;;  %v884_v48 = vsel %vm883_vm2, %v867_v45, %v2094_v60  ;;  %v909_v40 = vsel %vm900_vm3, %v892_v18, %v2106_v63  ;;  %v1467_v54 = vld [vmem:[%s1873_s10 + $0xc2] sm:$0xff] }
  0xe2   : > { %v901_v51 = vsel %vm900_vm3, %v884_v48, %v2108_v0  ;;  %v926_v52 = vsel %vm917_vm4, %v909_v40, %v2124_v25 }
  0xe3   : > { %v756_v50 = vpop.permute.xlu1 %755  ;;  %v740_v39 = vpop.permute.xlu0 %739  ;;  %v918_v44 = vsel %vm917_vm4, %v901_v51, %v2126_v26  ;;  %v943_v59 = vsel %vm934_vm5, %v926_v52, %v2146_v35 }
  0xe4   : > { %v935_v60 = vsel %vm934_vm5, %v918_v44, %v2148_v36  ;;  %v960_v63 = vsel %vm951_vm6, %v943_v59, %v754_v57  ;;  %v861_v57 = vsel %vm849_vm0, %v1914_v10, %v2130_v27 }
  0xe5   : > { %761 = vrot.lane.b32.xlu1 %v1451_v46, %s1772_s7  ;;  %745 = vrot.lane.b32.xlu0 %v1883_v3, %s1772_s7  ;;  %v952_v0 = vsel %vm951_vm6, %v935_v60, %v738_v58  ;;  %v853_v58 = vsel %vm849_vm0, %v1917_v11, %v2132_v28  ;;  %v878_v31 = vsel %vm866_vm1, %v861_v57, %v2152_v37 }
  0xe6   : > { %v870_v32 = vsel %vm866_vm1, %v853_v58, %v2154_v38  ;;  %v895_v27 = vsel %vm883_vm2, %v878_v31, %v2170_v1  ;;  %v859_v38 = vsel %vm849_vm0, %v196_v9, %v2062_v49  ;;  %v1454_v58 = vld [vmem:[%s1873_s10 + $0xe1] sm:$0xff] }
  0xe7   : > { %v818_v25 = vpop.permute.xlu1 %817  ;;  %v802_v15 = vpop.permute.xlu0 %801  ;;  %v887_v11 = vsel %vm883_vm2, %v870_v32, %v2172_v5  ;;  %v876_v1 = vsel %vm866_vm1, %v859_v38, %v2082_v55 }
  0xe8   : > { %v969_v26 = vsel %vm968_vm7, %v952_v0, %v802_v15  ;;  %v977_v17 = vsel %vm968_vm7, %v960_v63, %v818_v25  ;;  %v893_v45 = vsel %vm883_vm2, %v876_v1, %v2098_v61  ;;  %v1438_v0 = vld [vmem:[%s1873_s10 + $0xe0] sm:$0xff] }
  0xe9   : > { %511 = vrot.lane.b32.xlu1 %v1436_v53, %s2597_s9  ;;  %495 = vrot.lane.b32.xlu0 %v196_v9, %s2597_s9  ;;  %v188_v53 = vld [vmem:[%s1873_s10 + $0x8] sm:$0xff]  ;;  %v910_v9 = vsel %vm900_vm3, %v893_v45, %v2118_v19 }
  0xea   : > { %1539 = vmatprep.mubr.msk.f32.mxu0 %vm1001_vm8, %v969_v26  ;;  %1551 = vmatprep.mubr.msk.f32.mxu1 %vm1001_vm8, %v977_v17  ;;  %v851_v37 = vsel %vm849_vm0, %v188_v53, %v2054_v47 }
  0xeb   : > { %v378_v35 = vpop.permute.xlu1 %377  ;;  %v362_v36 = vpop.permute.xlu0 %361  ;;  %v868_v5 = vsel %vm866_vm1, %v851_v37, %v2084_v56  ;;  %v927_v56 = vsel %vm917_vm4, %v910_v9, %v2140_v33  ;;  %v2600_v37 = vld [vmem:[#allocation5_spill] sm:$0xff] }
  0xec   : > { %v885_v47 = vsel %vm883_vm2, %v868_v5, %v2100_v62  ;;  %v944_v61 = vsel %vm934_vm5, %v927_v56, %v2161_v42  ;;  %v854_v51 = vsel %vm849_vm0, %v1964_v21, %v362_v36 }
  0xed   : > { %573 = vrot.lane.b32.xlu1 %v1451_v46, %s1769_s24  ;;  %557 = vrot.lane.b32.xlu0 %v1883_v3, %s1769_s24  ;;  %v902_v55 = vsel %vm900_vm3, %v885_v47, %v2120_v24  ;;  %v961_v19 = vsel %vm951_vm6, %v944_v61, %v756_v50  ;;  %v1468_v50 = vld [vmem:[%s1873_s10 + $0xca] sm:$0xff] }
  0xee   : > { %v919_v18 = vsel %vm917_vm4, %v902_v55, %v2142_v34 }
  0xef   : > { %v568_v28 = vpop.permute.xlu1 %567  ;;  %v552_v29 = vpop.permute.xlu0 %551  ;;  %v936_v62 = vsel %vm934_vm5, %v919_v18, %v2163_v43 }
  0xf0   : > { %v2251_v30 = vsel %vm900_vm3, %v895_v27, %v568_v28  ;;  %v2254_v3 = vsel %vm900_vm3, %v887_v11, %v552_v29  ;;  %v953_v24 = vsel %vm951_vm6, %v936_v62, %v740_v39  ;;  %v862_v39 = vsel %vm849_vm0, %v1961_v20, %v378_v35  ;;  %v1437_v20 = vld [vmem:[%s1873_s10 + $0xd8] sm:$0xff]  ;;  %v1470_v27 = vld [vmem:[%s1873_s10 + $0xe2] sm:$0xff] }
  0xf1   : > { %763 = vrot.lane.b32.xlu1 %v1452_v7, %s1772_s7  ;;  %747 = vrot.lane.b32.xlu0 %v1880_v2, %s1772_s7 }
  0xf3   : > { %v2272_v46 = vpop.permute.xlu1 %629  ;;  %v2274_v49 = vpop.permute.xlu0 %613 }
  0xf4   : > { %v928_v45 = vsel %vm917_vm4, %v2188_v13, %v2272_v46  ;;  %v920_v47 = vsel %vm917_vm4, %v2191_v41, %v2274_v49 }
  0xf5   : > { %825 = vrot.lane.b32.xlu1 %v1467_v54, %s1773_s21  ;;  %809 = vrot.lane.b32.xlu0 %v1890_v4, %s1773_s21 }
  0xf7   : > { %v820_v33 = vpop.permute.xlu1 %819  ;;  %v804_v48 = vpop.permute.xlu0 %803 }
  0xf8   : > { %v978_v34 = vsel %vm968_vm7, %v961_v19, %v820_v33  ;;  %v970_v40 = vsel %vm968_vm7, %v953_v24, %v804_v48 }
  0xf9   : > { %575 = vrot.lane.b32.xlu1 %v1452_v7, %s1769_s24  ;;  %559 = vrot.lane.b32.xlu0 %v1880_v2, %s1769_s24  ;;  %s1674_s24 = sshll.u32 %s1774_s20, 4  ;;  %s1675_s24 = int_to_ptr.vmem [resolvable:$false] %s1674_s24 }
  0xfa   : > { %1540 = vmatmul.mubr.msk.f32.vlgmr.msra.gmra.mrb[0].mxu0 %vm1001_vm8, %v970_v40  ;;  %1552 = vmatmul.mubr.msk.f32.vlgmr.msra.gmra.mrb[0].mxu1 %vm1001_vm8, %v978_v34 }
  0xfb   : > { %v380_v42 = vpop.permute.xlu1 %379  ;;  %v364_v43 = vpop.permute.xlu0 %363 }
  0xfc   : > { %v863_v25 = vsel %vm849_vm0, %v1978_v22, %v380_v42  ;;  %v855_v15 = vsel %vm849_vm0, %v1981_v23, %v364_v43 }
  0xfd   : > { %637 = vrot.lane.b32.xlu1 %v1467_v54, %s1770_s27  ;;  %621 = vrot.lane.b32.xlu0 %v1890_v4, %s1770_s27 }
  0xff   : > { %v442_v2 = vpop.permute.xlu1 %441  ;;  %v426_v52 = vpop.permute.xlu0 %425 }
 0x100   : > { %v879_v44 = vsel %vm866_vm1, %v862_v39, %v442_v2  ;;  %v871_v59 = vsel %vm866_vm1, %v854_v51, %v426_v52 }
 0x101   : > { %827 = vrot.lane.b32.xlu1 %v1468_v50, %s1773_s21  ;;  %811 = vrot.lane.b32.xlu0 %v1897_v6, %s1773_s21 }
 0x103   : > { %v2313_v4 = vpop.permute.xlu1 %631  ;;  %v2315_v60 = vpop.permute.xlu0 %615 }
 0x104   : > { %v929_v42 = vsel %vm917_vm4, %v2251_v30, %v2313_v4  ;;  %v921_v43 = vsel %vm917_vm4, %v2254_v3, %v2315_v60  ;;  %v2601_v4 = vld [vmem:[#allocation6_spill] sm:$0xff] }
 0x105   : > { %639 = vrot.lane.b32.xlu1 %v1468_v50, %s1770_s27  ;;  %623 = vrot.lane.b32.xlu0 %v1897_v6, %s1770_s27 }
 0x107   : > { %v694_v21 = vpop.permute.xlu1 %693  ;;  %v678_v63 = vpop.permute.xlu0 %677 }
 0x108   : > { %v945_v9 = vsel %vm934_vm5, %v928_v45, %v694_v21  ;;  %v937_v55 = vsel %vm934_vm5, %v920_v47, %v678_v63  ;;  %v2602_v21 = vld [vmem:[#allocation7_spill] sm:$0xff] }
 0x109   : > { %701 = vrot.lane.b32.xlu1 %v1437_v20, %s1771_s28  ;;  %685 = vrot.lane.b32.xlu0 %v1904_v8, %s1771_s28  ;;  %v1453_v8 = vld [vmem:[%s1873_s10 + $0xd9] sm:$0xff] }
 0x10b   : > { %v444_v26 = vpop.permute.xlu1 %443  ;;  %v428_v17 = vpop.permute.xlu0 %427 }
 0x10c   : > { %v880_v6 = vsel %vm866_vm1, %v863_v25, %v444_v26  ;;  %v872_v35 = vsel %vm866_vm1, %v855_v15, %v428_v17 }
 0x10d   : > { %703 = vrot.lane.b32.xlu1 %v1438_v0, %s1771_s28  ;;  %687 = vrot.lane.b32.xlu0 %v1914_v10, %s1771_s28  ;;  %v1469_v10 = vld [vmem:[%s1873_s10 + $0xda] sm:$0xff]  ;;  %s175_s10 = sand.u32 1, %s1740_s13  }
 0x10e   : > { %s1367_s27 = sshll.u32 %s175_s10, 7  ;;  %s2528_s8 = scalar_lea.sflag [#allocation3], %s175_s10 }
 0x10f   : > { %v506_v36 = vpop.permute.xlu1 %505  ;;  %v490_v57 = vpop.permute.xlu0 %489  ;;  %s2470_s28 = scalar_lea.vmem [#allocation2], %s1367_s27  ;;  %s1676_s27 = scalar_lea.vmem %s1675_s24, 4096 }
 0x110   : > { %v896_v22 = vsel %vm883_vm2, %v879_v44, %v506_v36  ;;  %v888_v23 = vsel %vm883_vm2, %v871_v59, %v490_v57 }
 0x111   : > { %765 = vrot.lane.b32.xlu1 %v1453_v8, %s1772_s7  ;;  %749 = vrot.lane.b32.xlu0 %v1924_v12, %s1772_s7 }
 0x113   : > { %v696_v53 = vpop.permute.xlu1 %695  ;;  %v680_v31 = vpop.permute.xlu0 %679 }
 0x114   : > { %v946_v50 = vsel %vm934_vm5, %v929_v42, %v696_v53  ;;  %v938_v39 = vsel %vm934_vm5, %v921_v43, %v680_v31 }
 0x115   : > { %767 = vrot.lane.b32.xlu1 %v1454_v58, %s1772_s7  ;;  %751 = vrot.lane.b32.xlu0 %v1934_v14, %s1772_s7  ;;  %s1495_s7 = sshll.u32 %s1748_s15, 4 }
 0x116   : > { %s1273_s4 = sadd.s32 %s1495_s7, %s1491_s29 }
 0x117   : > { %v758_v32 = vpop.permute.xlu1 %757  ;;  %v742_v7 = vpop.permute.xlu0 %741  ;;  %s1492_s5 = sshll.u32 %s1273_s4, 7 }
 0x118   : > { %v962_v56 = vsel %vm951_vm6, %v945_v9, %v758_v32  ;;  %v954_v18 = vsel %vm951_vm6, %v937_v55, %v742_v7  ;;  %s2514_s6 = scalar_lea.hbm %s2584_s3, %s1492_s5 }
 0x119   : > { %829 = vrot.lane.b32.xlu1 %v1469_v10, %s1773_s21  ;;  %813 = vrot.lane.b32.xlu0 %v1941_v16, %s1773_s21 }
 0x11b   : > { %v508_v11 = vpop.permute.xlu1 %507  ;;  %v492_v28 = vpop.permute.xlu0 %491 }
 0x11c   : > { %v897_v12 = vsel %vm883_vm2, %v880_v6, %v508_v11  ;;  %v889_v29 = vsel %vm883_vm2, %v872_v35, %v492_v28 }
 0x11d   : > { %831 = vrot.lane.b32.xlu1 %v1470_v27, %s1773_s21  ;;  %815 = vrot.lane.b32.xlu0 %v2600_v37, %s1773_s21  ;;  %s1276_s21 = sshll.u32 %s2470_s28, 4  ;;  %s2516_s21 = int_to_ptr.vmem [resolvable:$true] %s1276_s21 }
 0x11e   : > { %s1670_s9 = scalar_lea.vmem %s2516_s21, 2048  ;;  %p1677_p2 = scmp.lt.s32.totalorder %s2516_s21, %s1675_s24 }
 0x11f   : > { %v570_v14 = vpop.permute.xlu1 %569  ;;  %v554_v38 = vpop.permute.xlu0 %553  ;;  %p1671_p13 = scmp.ne.s32.totalorder %s2516_s21, %s1670_s9  ;;  %p1678_p4 = scmp.lt.s32.totalorder %s1676_s27, %s1670_s9 }
 0x120   : > { %v2355_v1 = vsel %vm900_vm3, %v896_v22, %v570_v14  ;;  %v2358_v5 = vsel %vm900_vm3, %v888_v23, %v554_v38 }
 0x121   : > { %p1672_p0 = pnand %p1671_p13, %p1847_p3  ;;  %p1679_p5 = por %p1678_p4, %p1677_p2 }
 0x123   : > { %v760_v16 = vpop.permute.xlu1 %759  ;;  %v744_v54 = vpop.permute.xlu0 %743  ;;  %p1673_p1 = pneg %p1672_p0 }
 0x124   : > { %v963_v51 = vsel %vm951_vm6, %v946_v50, %v760_v16  ;;  %v955_v2 = vsel %vm951_vm6, %v938_v39, %v744_v54 }
 0x125   : > { %p1680_p6 = pnand %p1679_p5, %p1673_p1 }
 0x127   : > { %v822_v61 = vpop.permute.xlu1 %821  ;;  %v806_v62 = vpop.permute.xlu0 %805 }
 0x128   : > { %v979_v19 = vsel %vm968_vm7, %v962_v56, %v822_v61  ;;  %v971_v24 = vsel %vm968_vm7, %v954_v18, %v806_v62 }
 0x129   : > { %1542 = vmatprep.mubr.msk.f32.mxu0 %vm1001_vm8, %v971_v24  ;;  %1554 = vmatprep.mubr.msk.f32.mxu1 %vm1001_vm8, %v979_v19 }
 0x12b   : > { %v382_v13 = vpop.permute.xlu1 %381  ;;  %v366_v41 = vpop.permute.xlu0 %365 }
 0x12c   : > { %v864_v60 = vsel %vm849_vm0, %v2601_v4, %v382_v13  ;;  %v856_v63 = vsel %vm849_vm0, %v2602_v21, %v366_v41  ;;  %v2603_v21 = vld [vmem:[#allocation8_spill] sm:$0xff] }
 0x12f   : > { %v572_v46 = vpop.permute.xlu1 %571  ;;  %v556_v49 = vpop.permute.xlu0 %555 }
 0x130   : > { %v914_v33 = vsel %vm900_vm3, %v897_v12, %v572_v46  ;;  %v906_v48 = vsel %vm900_vm3, %v889_v29, %v556_v49 }
 0x133   : > { %v634_v34 = vpop.permute.xlu1 %633  ;;  %v618_v40 = vpop.permute.xlu0 %617 }
 0x134   : > { %v930_v29 = vsel %vm917_vm4, %v2355_v1, %v634_v34  ;;  %v922_v37 = vsel %vm917_vm4, %v2358_v5, %v618_v40 }
 0x137   : > { %v824_v52 = vpop.permute.xlu1 %823  ;;  %v808_v44 = vpop.permute.xlu0 %807 }
 0x138   : > { %v980_v59 = vsel %vm968_vm7, %v963_v51, %v824_v52  ;;  %v972_v20 = vsel %vm968_vm7, %v955_v2, %v808_v44 }
 0x139   : > { %1543 = vmatmul.mubr.msk.f32.gmra.mrb[2].mxu0 %vm1001_vm8, %v972_v20  ;;  %1555 = vmatmul.mubr.msk.f32.gmra.mrb[2].mxu1 %vm1001_vm8, %v980_v59 }
 0x13b   : > { %v2390_v30 = vpop.permute.xlu1 %383  ;;  %v2392_v3 = vpop.permute.xlu0 %367 }
 0x13f   : > { %v446_v0 = vpop.permute.xlu1 %445  ;;  %v430_v25 = vpop.permute.xlu0 %429 }
 0x140   : > { %v881_v15 = vsel %vm866_vm1, %v864_v60, %v446_v0  ;;  %v873_v26 = vsel %vm866_vm1, %v856_v63, %v430_v25  ;;  %v865_v63 = vsel %vm849_vm0, %v2603_v21, %v2390_v30  ;;  %v2604_v0 = vld [vmem:[#allocation9_spill] sm:$0xff] }
 0x141   : > { %v857_v25 = vsel %vm849_vm0, %v2604_v0, %v2392_v3 }
 0x143   : > { %v636_v17 = vpop.permute.xlu1 %635  ;;  %v620_v6 = vpop.permute.xlu0 %619 }
 0x144   : > { %v931_v61 = vsel %vm917_vm4, %v914_v33, %v636_v17  ;;  %v923_v62 = vsel %vm917_vm4, %v906_v48, %v620_v6 }
 0x147   : > { %v698_v35 = vpop.permute.xlu1 %697  ;;  %v682_v8 = vpop.permute.xlu0 %681 }
 0x148   : > { %v947_v14 = vsel %vm934_vm5, %v930_v29, %v698_v35  ;;  %v939_v38 = vsel %vm934_vm5, %v922_v37, %v682_v8 }
 0x14b   : > { %v448_v36 = vpop.permute.xlu1 %447  ;;  %v432_v57 = vpop.permute.xlu0 %431 }
 0x14c   : > { %v874_v6 = vsel %vm866_vm1, %v857_v25, %v432_v57 }
 0x14f   : > { %v510_v22 = vpop.permute.xlu1 %509  ;;  %v494_v23 = vpop.permute.xlu0 %493 }
 0x150   : > { %v898_v52 = vsel %vm883_vm2, %v881_v15, %v510_v22  ;;  %v890_v44 = vsel %vm883_vm2, %v873_v26, %v494_v23  ;;  %v882_v26 = vsel %vm866_vm1, %v865_v63, %v448_v36 }
 0x153   : > { %v700_v58 = vpop.permute.xlu1 %699  ;;  %v684_v53 = vpop.permute.xlu0 %683 }
 0x154   : > { %v948_v19 = vsel %vm934_vm5, %v931_v61, %v700_v58  ;;  %v940_v24 = vsel %vm934_vm5, %v923_v62, %v684_v53 }
 0x157   : > { %v762_v31 = vpop.permute.xlu1 %761  ;;  %v746_v10 = vpop.permute.xlu0 %745 }
 0x158   : > { %v964_v16 = vsel %vm951_vm6, %v947_v14, %v762_v31  ;;  %v956_v54 = vsel %vm951_vm6, %v939_v38, %v746_v10 }
 0x15b   : > { %v512_v32 = vpop.permute.xlu1 %511  ;;  %v496_v7 = vpop.permute.xlu0 %495 }
 0x15c   : > { %v899_v22 = vsel %vm883_vm2, %v882_v26, %v512_v32  ;;  %v891_v30 = vsel %vm883_vm2, %v874_v6, %v496_v7 }
 0x15f   : > { %v574_v27 = vpop.permute.xlu1 %573  ;;  %v558_v11 = vpop.permute.xlu0 %557 }
 0x160   : > { %v915_v4 = vsel %vm900_vm3, %v898_v52, %v574_v27  ;;  %v907_v60 = vsel %vm900_vm3, %v890_v44, %v558_v11 }
 0x163   : > { %v764_v28 = vpop.permute.xlu1 %763  ;;  %v748_v12 = vpop.permute.xlu0 %747 }
 0x164   : > { %v965_v13 = vsel %vm951_vm6, %v948_v19, %v764_v28  ;;  %v957_v41 = vsel %vm951_vm6, %v940_v24, %v748_v12 }
 0x167   : > { %v826_v45 = vpop.permute.xlu1 %825  ;;  %v810_v47 = vpop.permute.xlu0 %809 }
 0x168   : > { %v981_v9 = vsel %vm968_vm7, %v964_v16, %v826_v45  ;;  %v973_v55 = vsel %vm968_vm7, %v956_v54, %v810_v47  ;;  %v2462_v16 = vld [vmem:[%s2583_s2] ss:$0 sm:$0xff] }
 0x169   : > { %1545 = vmatprep.mubr.msk.f32.mxu0 %vm1001_vm8, %v973_v55  ;;  %1557 = vmatprep.mubr.msk.f32.mxu1 %vm1001_vm8, %v981_v9 }
 0x16b   : > { %v576_v1 = vpop.permute.xlu1 %575  ;;  %v560_v5 = vpop.permute.xlu0 %559 }
 0x16c   : > { %v916_v31 = vsel %vm900_vm3, %v899_v22, %v576_v1  ;;  %v908_v36 = vsel %vm900_vm3, %v891_v30, %v560_v5 }
 0x16f   : > { %v638_v56 = vpop.permute.xlu1 %637  ;;  %v622_v18 = vpop.permute.xlu0 %621 }
 0x170   : > { %v932_v17 = vsel %vm917_vm4, %v915_v4, %v638_v56  ;;  %v924_v15 = vsel %vm917_vm4, %v907_v60, %v622_v18 }
 0x173   : > { %v828_v46 = vpop.permute.xlu1 %827  ;;  %v812_v49 = vpop.permute.xlu0 %811 }
 0x174   : > { %v982_v34 = vsel %vm968_vm7, %v965_v13, %v828_v46  ;;  %v974_v40 = vsel %vm968_vm7, %v957_v41, %v812_v49 }
 0x175   : > { %1546 = vmatmul.mubr.msk.f32.gmra.mrb[4].mxu0 %vm1001_vm8, %v974_v40  ;;  %1558 = vmatmul.mubr.msk.f32.gmra.mrb[4].mxu1 %vm1001_vm8, %v982_v34 }
 0x177   : > { %v640_v33 = vpop.permute.xlu1 %639  ;;  %v624_v48 = vpop.permute.xlu0 %623 }
 0x178   : > { %v933_v27 = vsel %vm917_vm4, %v916_v31, %v640_v33  ;;  %v925_v32 = vsel %vm917_vm4, %v908_v36, %v624_v48 }
 0x17b   : > { %v702_v42 = vpop.permute.xlu1 %701  ;;  %v686_v43 = vpop.permute.xlu0 %685 }
 0x17c   : > { %v949_v35 = vsel %vm934_vm5, %v932_v17, %v702_v42  ;;  %v941_v8 = vsel %vm934_vm5, %v924_v15, %v686_v43 }
 0x17f   : > { %v704_v50 = vpop.permute.xlu1 %703  ;;  %v688_v39 = vpop.permute.xlu0 %687 }
 0x180   : > { %v950_v7 = vsel %vm934_vm5, %v933_v27, %v704_v50  ;;  %v942_v11 = vsel %vm934_vm5, %v925_v32, %v688_v39 }
 0x183   : > { %v766_v51 = vpop.permute.xlu1 %765  ;;  %v750_v2 = vpop.permute.xlu0 %749 }
 0x184   : > { %v966_v23 = vsel %vm951_vm6, %v949_v35, %v766_v51  ;;  %v958_v3 = vsel %vm951_vm6, %v941_v8, %v750_v2 }
 0x187   : > { %v768_v59 = vpop.permute.xlu1 %767  ;;  %v752_v20 = vpop.permute.xlu0 %751 }
 0x188   : > { %v967_v28 = vsel %vm951_vm6, %v950_v7, %v768_v59  ;;  %v959_v12 = vsel %vm951_vm6, %v942_v11, %v752_v20 }
 0x18b   : > { %v830_v58 = vpop.permute.xlu1 %829  ;;  %v814_v53 = vpop.permute.xlu0 %813 }
 0x18c   : > { %v983_v57 = vsel %vm968_vm7, %v966_v23, %v830_v58  ;;  %v975_v10 = vsel %vm968_vm7, %v958_v3, %v814_v53 }
 0x18d   : > { %1548 = vmatprep.mubr.msk.f32.mxu0 %vm1001_vm8, %v975_v10  ;;  %1560 = vmatprep.mubr.msk.f32.mxu1 %vm1001_vm8, %v983_v57 }
 0x18f   : > { %v832_v29 = vpop.permute.xlu1 %831  ;;  %v816_v37 = vpop.permute.xlu0 %815 }
 0x190   : > { %v984_v14 = vsel %vm968_vm7, %v967_v28, %v832_v29  ;;  %v976_v38 = vsel %vm968_vm7, %v959_v12, %v816_v37 }
 0x191   : > { %1549 = vmatmul.mubr.msk.f32.gmra.mrb[6].mxu0 %vm1001_vm8, %v976_v38  ;;  %1561 = vmatmul.mubr.msk.f32.gmra.mrb[6].mxu1 %vm1001_vm8, %v984_v14 }
 0x1cd   : > { %v1541_v54 = vpop.f32.mrb[0].mxu0  ;;  %v1553_v45 = vpop.f32.mrb[0].mxu1 }
 0x1ce   : > { %v1122_v47 = vadd.f32 %v1541_v54, %v2462_v16  ;;  %v1162_v9 = vadd.f32 %v1553_v45, %v2462_v16  ;;  %v1116_v55 = vpop.f32.mrb[1].mxu0  ;;  %v1156_v1 = vpop.f32.mrb[1].mxu1 }
 0x1cf   : > { %v1117_v5 = vadd.f32 %v2462_v16, %v1116_v55  ;;  %v1157_v56 = vadd.f32 %v2462_v16, %v1156_v1 }
 0x1d0   : > { %vm1196_vm9 = vcmp.ge.f32.partialorder %v1122_v47, 0.0  ;;  %v1212_v18 = vmul.f32 0.2, %v1122_v47  ;;  %vm1204_vm10 = vcmp.ge.f32.partialorder %v1162_v9, 0.0  ;;  %v1220_v61 = vmul.f32 0.2, %v1162_v9 }
 0x1d1   : > { %vm1195_vm11 = vcmp.ge.f32.partialorder %v1117_v5, 0.0  ;;  %v1211_v62 = vmul.f32 0.2, %v1117_v5  ;;  %vm1203_vm12 = vcmp.ge.f32.partialorder %v1157_v56, 0.0  ;;  %v1219_v19 = vmul.f32 0.2, %v1157_v56 }
 0x1d2   : > { %v1228_v24 = vsel %vm1196_vm9, %v1122_v47, %v1212_v18  ;;  %v1236_v13 = vsel %vm1204_vm10, %v1162_v9, %v1220_v61 }
 0x1d3   : > { %1244 = vst.msk [vmem:[%s2470_s28 + $0x8] sm:$0xff] %vm900_vm3, %v1228_v24  ;;  %1252 = vst.msk [vmem:[%s2470_s28 + $0x48] sm:$0xff] %vm900_vm3, %v1236_v13  ;;  %v1227_v41 = vsel %vm1195_vm11, %v1117_v5, %v1211_v62  ;;  %v1235_v46 = vsel %vm1203_vm12, %v1157_v56, %v1219_v19 }
 0x1d4   : > { %1243 = vst.msk [vmem:[%s2470_s28] sm:$0xff] %vm900_vm3, %v1227_v41  ;;  %1251 = vst.msk [vmem:[%s2470_s28 + $0x40] sm:$0xff] %vm900_vm3, %v1235_v46 }
 0x20c   : > { %v1544_v49 = vpop.f32.mrb[2].mxu0  ;;  %v1556_v34 = vpop.f32.mrb[2].mxu1 }
 0x20d   : > { %v1132_v40 = vadd.f32 %v1544_v49, %v2462_v16  ;;  %v1172_v33 = vadd.f32 %v1556_v34, %v2462_v16  ;;  %v1126_v48 = vpop.f32.mrb[3].mxu0  ;;  %v1166_v42 = vpop.f32.mrb[3].mxu1 }
 0x20e   : > { %v1127_v43 = vadd.f32 %v2462_v16, %v1126_v48  ;;  %v1167_v50 = vadd.f32 %v2462_v16, %v1166_v42 }
 0x20f   : > { %vm1198_vm13 = vcmp.ge.f32.partialorder %v1132_v40, 0.0  ;;  %v1214_v39 = vmul.f32 0.2, %v1132_v40  ;;  %vm1206_vm14 = vcmp.ge.f32.partialorder %v1172_v33, 0.0  ;;  %v1222_v51 = vmul.f32 0.2, %v1172_v33 }
 0x210   : > { %vm1197_vm15 = vcmp.ge.f32.partialorder %v1127_v43, 0.0  ;;  %v1213_v2 = vmul.f32 0.2, %v1127_v43  ;;  %vm1205_vm0 = vcmp.ge.f32.partialorder %v1167_v50, 0.0  ;;  %v1221_v52 = vmul.f32 0.2, %v1167_v50 }
 0x211   : > { %v1230_v44 = vsel %vm1198_vm13, %v1132_v40, %v1214_v39  ;;  %v1238_v59 = vsel %vm1206_vm14, %v1172_v33, %v1222_v51 }
 0x212   : > { %1246 = vst.msk [vmem:[%s2470_s28 + $0x18] sm:$0xff] %vm900_vm3, %v1230_v44  ;;  %1254 = vst.msk [vmem:[%s2470_s28 + $0x58] sm:$0xff] %vm900_vm3, %v1238_v59  ;;  %v1229_v20 = vsel %vm1197_vm15, %v1127_v43, %v1213_v2  ;;  %v1237_v4 = vsel %vm1205_vm0, %v1167_v50, %v1221_v52 }
 0x213   : > { %1245 = vst.msk [vmem:[%s2470_s28 + $0x10] sm:$0xff] %vm900_vm3, %v1229_v20  ;;  %1253 = vst.msk [vmem:[%s2470_s28 + $0x50] sm:$0xff] %vm900_vm3, %v1237_v4 }
 0x248   : > { %v1547_v60 = vpop.f32.mrb[4].mxu0  ;;  %v1559_v21 = vpop.f32.mrb[4].mxu1 }
 0x249   : > { %v1142_v63 = vadd.f32 %v1547_v60, %v2462_v16  ;;  %v1182_v0 = vadd.f32 %v1559_v21, %v2462_v16  ;;  %v1136_v25 = vpop.f32.mrb[5].mxu0  ;;  %v1176_v17 = vpop.f32.mrb[5].mxu1 }
 0x24a   : > { %v1137_v15 = vadd.f32 %v2462_v16, %v1136_v25  ;;  %v1177_v26 = vadd.f32 %v2462_v16, %v1176_v17 }
 0x24b   : > { %vm1200_vm1 = vcmp.ge.f32.partialorder %v1142_v63, 0.0  ;;  %v1216_v6 = vmul.f32 0.2, %v1142_v63  ;;  %vm1208_vm2 = vcmp.ge.f32.partialorder %v1182_v0, 0.0  ;;  %v1224_v35 = vmul.f32 0.2, %v1182_v0 }
 0x24c   : > { %vm1199_vm4 = vcmp.ge.f32.partialorder %v1137_v15, 0.0  ;;  %v1215_v8 = vmul.f32 0.2, %v1137_v15  ;;  %vm1207_vm5 = vcmp.ge.f32.partialorder %v1177_v26, 0.0  ;;  %v1223_v22 = vmul.f32 0.2, %v1177_v26 }
 0x24d   : > { %v1232_v30 = vsel %vm1200_vm1, %v1142_v63, %v1216_v6  ;;  %v1240_v23 = vsel %vm1208_vm2, %v1182_v0, %v1224_v35 }
 0x24e   : > { %1248 = vst.msk [vmem:[%s2470_s28 + $0x28] sm:$0xff] %vm900_vm3, %v1232_v30  ;;  %1256 = vst.msk [vmem:[%s2470_s28 + $0x68] sm:$0xff] %vm900_vm3, %v1240_v23  ;;  %v1231_v3 = vsel %vm1199_vm4, %v1137_v15, %v1215_v8  ;;  %v1239_v58 = vsel %vm1207_vm5, %v1177_v26, %v1223_v22 }
 0x24f   : > { %1247 = vst.msk [vmem:[%s2470_s28 + $0x20] sm:$0xff] %vm900_vm3, %v1231_v3  ;;  %1255 = vst.msk [vmem:[%s2470_s28 + $0x60] sm:$0xff] %vm900_vm3, %v1239_v58 }
 0x264   : > { %v1550_v53 = vpop.f32.mrb[6].mxu0  ;;  %v1562_v31 = vpop.f32.mrb[6].mxu1 }
 0x265   : > { %v1152_v36 = vadd.f32 %v1550_v53, %v2462_v16  ;;  %v1192_v57 = vadd.f32 %v1562_v31, %v2462_v16  ;;  %v1146_v10 = vpop.f32.mrb[7].mxu0  ;;  %v1186_v27 = vpop.f32.mrb[7].mxu1 }
 0x266   : > { %v1147_v32 = vadd.f32 %v2462_v16, %v1146_v10  ;;  %v1187_v7 = vadd.f32 %v2462_v16, %v1186_v27 }
 0x267   : > { %vm1202_vm6 = vcmp.ge.f32.partialorder %v1152_v36, 0.0  ;;  %v1218_v11 = vmul.f32 0.2, %v1152_v36  ;;  %vm1210_vm7 = vcmp.ge.f32.partialorder %v1192_v57, 0.0  ;;  %v1226_v28 = vmul.f32 0.2, %v1192_v57 }
 0x268   : > { %vm1201_vm8 = vcmp.ge.f32.partialorder %v1147_v32, 0.0  ;;  %v1217_v12 = vmul.f32 0.2, %v1147_v32  ;;  %vm1209_vm9 = vcmp.ge.f32.partialorder %v1187_v7, 0.0  ;;  %v1225_v29 = vmul.f32 0.2, %v1187_v7 }
 0x269   : > { %v1234_v37 = vsel %vm1202_vm6, %v1152_v36, %v1218_v11  ;;  %v1242_v14 = vsel %vm1210_vm7, %v1192_v57, %v1226_v28 }
 0x26a   : > { %1250 = vst.msk [vmem:[%s2470_s28 + $0x38] sm:$0xff] %vm900_vm3, %v1234_v37  ;;  %1258 = vst.msk [vmem:[%s2470_s28 + $0x78] sm:$0xff] %vm900_vm3, %v1242_v14  ;;  %v1233_v38 = vsel %vm1201_vm8, %v1147_v32, %v1217_v12  ;;  %v1241_v16 = vsel %vm1209_vm9, %v1187_v7, %v1225_v29 }
 0x26b   : > { %1249 = vst.msk [vmem:[%s2470_s28 + $0x30] sm:$0xff] %vm900_vm3, %v1233_v38  ;;  %1257 = vst.msk [vmem:[%s2470_s28 + $0x70] sm:$0xff] %vm900_vm3, %v1241_v16 }
 0x26c   : > { %1683 = shalt.err (!%p1680_p6)
}
 0x26d   : > { %s1684_s10 = scalar_lea.hbm %s2514_s6, 2048  ;;  %s1688_s29 = scalar_lea.hbm %s2584_s3, 8192 }
 0x26e   : > { %p1685_p7 = scmp.ne.s32.totalorder %s2514_s6, %s1684_s10  ;;  %p1689_p11 = scmp.lt.u32.totalorder %s2514_s6, %s2584_s3 }
 0x26f   : > { %p1690_p12 = scmp.lt.u32.totalorder %s1688_s29, %s1684_s10  ;;  %p1692_p0 = scmp.lt.u32.totalorder %s1684_s10, %s2514_s6 }
 0x270   : > { %p1686_p9 = pnand %p1685_p7, %p1847_p3 }
 0x271   : > { %p1691_p13 = por %p1690_p12, %p1689_p11 }
 0x272   : > { %p1687_p10 = pneg %p1686_p9 }
 0x273   : > { %p1693_p1 = por %p1692_p0, %p1691_p13 }
 0x275   : > { %p1694_p2 = pnand %p1693_p1, %p1687_p10 }
 0x277   : > { %1697 = shalt.err (!%p1694_p2)
}
 0x278   : > { %s1775_s15 = smov 128  }
 0x279   : > { %1590 = dma.vmem_to_hbm [thread:$0]  (%p1847_p3), %s2516_s21, 2048, %s2514_s6, %s2528_s8, %s1775_s15, %s1775_s15, %s1766_s11  }
 0x27a PF: > { %p1596_p4 = scmp.ge.s32.totalorder %s1764_s19, 2  ;;  %s1291_s16 = sand.u32 1, %s1736_s12  }
 0x27b   : > { %s1292_s9 = scalar_lea.sflag [#allocation3], %s1291_s16 }
 0x27c   : > { %p1593_p5 = pnand %p1596_p4, %p1856_p8 }
 0x27e   : > { %1731 = dma.done.wait (!%p1593_p5), %s1292_s9, 2048  }
 0x27f   : > { %1733 = vsyncadd (!%p1593_p5), %s1292_s9, 4294965248  ;;  %s16_s19 = sadd.s32 1, %s1764_s19   ;;  %s2605_s12 = smov %s1740_s13 }
 0x280   : > { %p13_p6 = scmp.ge.s32.totalorder %s16_s19, 6   ;;  %s2606_s13 = smov %s1744_s14 }
 0x281   : > { %s2607_s14 = smov %s1865_s30  ;;  %s2608_s15 = smov %s1756_s17 }
 0x282   : > { %s2609_s16 = smov %s1760_s18  ;;  %s2610_s17 = smov %s2613_s22 }
 0x283   : > { %s2611_s18 = smov %s2617_s23  ;;  %15 = sbr.rel (!%p13_p6) target bundleno = 5 (0x5), region = 70 }
 0x28a   :  { %1297 = vsyncpa [#allocation3], 1 }
 0x28b   :  { %1299 = vsyncpa [#allocation3 + $0x1], 1 }

</bundles_post_ra>
